<compile_context>
chip_gen: v5e
topology: v5e:2x2
jax: 0.10.0
libtpu: 0.0.40
codegen_flags: <defaults>
</compile_context>

<pallas_src>
import numpy as np
import jax
import jax.numpy as jnp
from jax import lax
from jax.experimental import pallas as pl
from jax.experimental.pallas import tpu as pltpu


# --------------------------- constant operators ----------------------------- #

def _avg_mat(n, f):
    """(n//f, n) matrix with 1/f where col//f == row (1-D average pooling)."""
    r = jnp.arange(n // f)[:, None]
    c = jnp.arange(n)[None, :]
    return jnp.where(c // f == r, 1.0 / f, 0.0).astype(jnp.float32)


def build_constants(w, b, H, W):
    """Fold conv weights + every (static) pooling operator into small constant
    matrices.  Run once, outside the per-step hot path."""
    Cout, Cin, KH, KW = w.shape
    assert KH == 3 and KW == 3, "conv1 assumed 3x3"
    assert H % 16 == 0 and W % 16 == 0, "spatial dims must be divisible by 16"
    H2, H4, H16 = H // 2, H // 4, H // 16
    W2, W4, W16 = W // 2, W // 4, W // 16

    w = w.astype(jnp.float32)
    b = b.astype(jnp.float32)

    # ind[a, i, r] = 1 iff source row r is touched by pooled output row i via
    # conv tap a (padding=1 handled by omission: out-of-range rows contribute 0)
    a_ = jnp.arange(KH)[:, None, None]
    i_ = jnp.arange(H2)[None, :, None]
    r_ = jnp.arange(H)[None, None, :]
    ind = ((r_ == 2 * i_ + a_ - 1) | (r_ == 2 * i_ + a_)).astype(jnp.float32)

    # A1[d, (o,i), (c,r)] = 0.5 * sum_a w[o,c,a,d] * ind[a,i,r]
    A1 = 0.5 * jnp.einsum('ocad,air->doicr', w, ind)
    A1 = A1.reshape(KW, Cout * H2, Cin * H)

    # Mw[d, s, j] = 0.5 iff source col s in {2j+d-1, 2j+d}
    d_ = jnp.arange(KW)[:, None, None]
    s_ = jnp.arange(W)[None, :, None]
    j_ = jnp.arange(W2)[None, None, :]
    Mw = 0.5 * ((s_ == 2 * j_ + d_ - 1) | (s_ == 2 * j_ + d_)).astype(jnp.float32)

    bias1 = jnp.repeat(b, H2).reshape(Cout * H2, 1)            # (Cout*H2, 1)

    eye = jnp.eye(Cout, dtype=jnp.float32)
    BH2 = jnp.kron(eye, _avg_mat(H2, 2))                       # (Cout*H4, Cout*H2)
    BW2 = _avg_mat(W2, 2).T                                    # (W2, W4)
    BH4 = jnp.kron(eye, _avg_mat(H4, 4))                       # (Cout*H16, Cout*H4)  (two pools composed)
    BW4 = _avg_mat(W4, 4).T                                    # (W4, W16)
    return A1, Mw, bias1, BH2, BW2, BH4, BW4


# ------------------------------ fused kernel -------------------------------- #

def _fused_kernel(x_ref, a1_ref, mw_ref, b1_ref, bh2_ref, bw2_ref,
                  bh4_ref, bw4_ref, o_ref):
    f32 = jnp.float32
    xf = x_ref[0]                                               # (Cin*H, W)

    # conv(3x3, pad 1) + first 2x2 avg-pool, exactly folded into 3 matmul pairs
    acc = None
    for d in range(3):
        t = jnp.dot(a1_ref[d], xf, preferred_element_type=f32)   # (Cout*H2, W)
        t = jnp.dot(t, mw_ref[d], preferred_element_type=f32)    # (Cout*H2, W2)
        acc = t if acc is None else acc + t
    s = jnp.maximum(acc + b1_ref[...], 0.0)                      # relu

    # second 2x2 avg-pool -> relu
    s = jnp.dot(bh2_ref[...], s, preferred_element_type=f32)     # (Cout*H4, W2)
    s = jnp.maximum(jnp.dot(s, bw2_ref[...], preferred_element_type=f32), 0.0)

    # two more 2x2 avg-pools (composed 4x4) -> relu -> sigmoid
    s = jnp.dot(bh4_ref[...], s, preferred_element_type=f32)     # (Cout*H16, W4)
    s = jnp.maximum(jnp.dot(s, bw4_ref[...], preferred_element_type=f32), 0.0)
    o_ref[0] = jax.nn.sigmoid(s).astype(o_ref.dtype)


@jax.jit
def forward(x, A1, Mw, bias1, BH2, BW2, BH4, BW4):
    N, Cin, H, W = x.shape
    H16, W16 = H // 16, W // 16
    Cout = BH4.shape[0] // H16
    xf = x.reshape(N, Cin * H, W).astype(jnp.float32)            # free reshape

    out = pl.pallas_call(
        _fused_kernel,
        out_shape=jax.ShapeDtypeStruct((N, Cout * H16, W16), jnp.float32),
        grid=(N,),
        in_specs=[
            pl.BlockSpec((1, Cin * H, W), lambda n: (n, 0, 0)),
            pl.BlockSpec(A1.shape,    lambda n: (0, 0, 0)),
            pl.BlockSpec(Mw.shape,    lambda n: (0, 0, 0)),
            pl.BlockSpec(bias1.shape, lambda n: (0, 0)),
            pl.BlockSpec(BH2.shape,   lambda n: (0, 0)),
            pl.BlockSpec(BW2.shape,   lambda n: (0, 0)),
            pl.BlockSpec(BH4.shape,   lambda n: (0, 0)),
            pl.BlockSpec(BW4.shape,   lambda n: (0, 0)),
        ],
        out_specs=pl.BlockSpec((1, Cout * H16, W16), lambda n: (n, 0, 0)),
        compiler_params=pltpu.CompilerParams(
            dimension_semantics=("parallel",)),
    )(xf, A1, Mw, bias1, BH2, BW2, BH4, BW4)

    return out.reshape(N, Cout, H16, W16)


# -------------------------------- reference --------------------------------- #

def reference_forward(x, w, b):
    y = lax.conv_general_dilated(
        x, w, window_strides=(1, 1), padding=((1, 1), (1, 1)),
        dimension_numbers=("NCHW", "OIHW", "NCHW")) + b.reshape(1, -1, 1, 1)

    def avgpool2(z):
        n, c, h, ww = z.shape
        return z.reshape(n, c, h // 2, 2, ww // 2, 2).mean(axis=(3, 5))

    y = avgpool2(y)
    y = jnp.maximum(y, 0.0)
    y = avgpool2(y)
    y = jnp.maximum(y, 0.0)
    y = avgpool2(y)
    y = avgpool2(y)
    y = jnp.maximum(y, 0.0)
    return jax.nn.sigmoid(y)


# ----------------------------------- main ------------------------------------ #

if __name__ == "__main__":
    key = jax.random.PRNGKey(0)
    kx, kw_, kb = jax.random.split(key, 3)

    N, Cin, H, W = 2, 4, 32, 32
    Cout, KH, KW = 8, 3, 3

    x = jax.random.normal(kx, (N, Cin, H, W), dtype=jnp.float32)
    fan_in = Cin * KH * KW
    bound = 1.0 / np.sqrt(fan_in)
    w = jax.random.uniform(kw_, (Cout, Cin, KH, KW), jnp.float32, -bound, bound)
    b = jax.random.uniform(kb, (Cout,), jnp.float32, -bound, bound)

    consts = build_constants(w, b, H, W)     # one-time weight/pool folding
    out = forward(x, *consts)
    out = jax.block_until_ready(out)

    ref = reference_forward(x, w, b)
    if not np.allclose(np.asarray(out), np.asarray(ref), atol=1e-5, rtol=1e-5):
        raise AssertionError("Pallas output does not match reference")

    assert out.shape == (N, Cout, H // 16, W // 16)
    print("KERNEL_OK")
</pallas_src>

<mosaic_0001>
module attributes {stable_mosaic.version = 11 : i64} {
  func.func @_fused_kernel(%arg0: i32, %arg1: memref<1x128x32xf32, #tpu.memory_space<vmem>>, %arg2: memref<3x128x128xf32, #tpu.memory_space<vmem>>, %arg3: memref<3x32x16xf32, #tpu.memory_space<vmem>>, %arg4: memref<128x1xf32, #tpu.memory_space<vmem>>, %arg5: memref<64x128xf32, #tpu.memory_space<vmem>>, %arg6: memref<16x8xf32, #tpu.memory_space<vmem>>, %arg7: memref<16x64xf32, #tpu.memory_space<vmem>>, %arg8: memref<8x2xf32, #tpu.memory_space<vmem>>, %arg9: memref<1x16x2xf32, #tpu.memory_space<vmem>>) attributes {dimension_semantics = [#tpu.dimension_semantics<parallel>], iteration_bounds = array<i64: 2>, scalar_prefetch = 0 : i64, scratch_operands = 0 : i64, tpu.core_type = #tpu.core_type<tc>, window_params = [{transform_indices = @transform_0, window_bounds = array<i64: 1, 128, 32>}, {pipeline_mode = #tpu.pipeline_mode<synchronous>, transform_indices = @transform_1, window_bounds = array<i64: 3, 128, 128>}, {pipeline_mode = #tpu.pipeline_mode<synchronous>, transform_indices = @transform_2, window_bounds = array<i64: 3, 32, 16>}, {pipeline_mode = #tpu.pipeline_mode<synchronous>, transform_indices = @transform_3, window_bounds = array<i64: 128, 1>}, {pipeline_mode = #tpu.pipeline_mode<synchronous>, transform_indices = @transform_4, window_bounds = array<i64: 64, 128>}, {pipeline_mode = #tpu.pipeline_mode<synchronous>, transform_indices = @transform_5, window_bounds = array<i64: 16, 8>}, {pipeline_mode = #tpu.pipeline_mode<synchronous>, transform_indices = @transform_6, window_bounds = array<i64: 16, 64>}, {pipeline_mode = #tpu.pipeline_mode<synchronous>, transform_indices = @transform_7, window_bounds = array<i64: 8, 2>}, {transform_indices = @transform_8, window_bounds = array<i64: 1, 16, 2>}]} {
    %c0 = arith.constant 0 : index
    %c0_0 = arith.constant 0 : index
    %c0_1 = arith.constant 0 : index
    %0 = vector.load %arg1[%c0, %c0_0, %c0_1] : memref<1x128x32xf32, #tpu.memory_space<vmem>>, vector<1x128x32xf32>
    %1 = vector.shape_cast %0 : vector<1x128x32xf32> to vector<128x32xf32>
    %c0_2 = arith.constant 0 : index
    %c0_3 = arith.constant 0 : index
    %c0_4 = arith.constant 0 : index
    %2 = vector.load %arg2[%c0_2, %c0_3, %c0_4] : memref<3x128x128xf32, #tpu.memory_space<vmem>>, vector<1x128x128xf32>
    %3 = vector.shape_cast %2 : vector<1x128x128xf32> to vector<128x128xf32>
    %cst = arith.constant dense<0.000000e+00> : vector<128x32xf32>
    %4 = tpu.matmul %3, %1, %cst {dimension_numbers = #tpu.dot_dimension_numbers<[1], [0], [0], [1], [0, 0, 1, 1], [], []>} : vector<128x128xf32>, vector<128x32xf32>, vector<128x32xf32> -> vector<128x32xf32>
    %c0_5 = arith.constant 0 : index
    %c0_6 = arith.constant 0 : index
    %c0_7 = arith.constant 0 : index
    %5 = vector.load %arg3[%c0_5, %c0_6, %c0_7] : memref<3x32x16xf32, #tpu.memory_space<vmem>>, vector<1x32x16xf32>
    %6 = vector.shape_cast %5 : vector<1x32x16xf32> to vector<32x16xf32>
    %cst_8 = arith.constant dense<0.000000e+00> : vector<128x16xf32>
    %7 = tpu.matmul %4, %6, %cst_8 {dimension_numbers = #tpu.dot_dimension_numbers<[1], [0], [0], [1], [0, 0, 1, 1], [], []>} : vector<128x32xf32>, vector<32x16xf32>, vector<128x16xf32> -> vector<128x16xf32>
    %c1 = arith.constant 1 : index
    %c0_9 = arith.constant 0 : index
    %c0_10 = arith.constant 0 : index
    %8 = vector.load %arg2[%c1, %c0_9, %c0_10] : memref<3x128x128xf32, #tpu.memory_space<vmem>>, vector<1x128x128xf32>
    %9 = vector.shape_cast %8 : vector<1x128x128xf32> to vector<128x128xf32>
    %cst_11 = arith.constant dense<0.000000e+00> : vector<128x32xf32>
    %10 = tpu.matmul %9, %1, %cst_11 {dimension_numbers = #tpu.dot_dimension_numbers<[1], [0], [0], [1], [0, 0, 1, 1], [], []>} : vector<128x128xf32>, vector<128x32xf32>, vector<128x32xf32> -> vector<128x32xf32>
    %c1_12 = arith.constant 1 : index
    %c0_13 = arith.constant 0 : index
    %c0_14 = arith.constant 0 : index
    %11 = vector.load %arg3[%c1_12, %c0_13, %c0_14] : memref<3x32x16xf32, #tpu.memory_space<vmem>>, vector<1x32x16xf32>
    %12 = vector.shape_cast %11 : vector<1x32x16xf32> to vector<32x16xf32>
    %cst_15 = arith.constant dense<0.000000e+00> : vector<128x16xf32>
    %13 = tpu.matmul %10, %12, %cst_15 {dimension_numbers = #tpu.dot_dimension_numbers<[1], [0], [0], [1], [0, 0, 1, 1], [], []>} : vector<128x32xf32>, vector<32x16xf32>, vector<128x16xf32> -> vector<128x16xf32>
    %14 = arith.addf %7, %13 : vector<128x16xf32>
    %c2 = arith.constant 2 : index
    %c0_16 = arith.constant 0 : index
    %c0_17 = arith.constant 0 : index
    %15 = vector.load %arg2[%c2, %c0_16, %c0_17] : memref<3x128x128xf32, #tpu.memory_space<vmem>>, vector<1x128x128xf32>
    %16 = vector.shape_cast %15 : vector<1x128x128xf32> to vector<128x128xf32>
    %cst_18 = arith.constant dense<0.000000e+00> : vector<128x32xf32>
    %17 = tpu.matmul %16, %1, %cst_18 {dimension_numbers = #tpu.dot_dimension_numbers<[1], [0], [0], [1], [0, 0, 1, 1], [], []>} : vector<128x128xf32>, vector<128x32xf32>, vector<128x32xf32> -> vector<128x32xf32>
    %c2_19 = arith.constant 2 : index
    %c0_20 = arith.constant 0 : index
    %c0_21 = arith.constant 0 : index
    %18 = vector.load %arg3[%c2_19, %c0_20, %c0_21] : memref<3x32x16xf32, #tpu.memory_space<vmem>>, vector<1x32x16xf32>
    %19 = vector.shape_cast %18 : vector<1x32x16xf32> to vector<32x16xf32>
    %cst_22 = arith.constant dense<0.000000e+00> : vector<128x16xf32>
    %20 = tpu.matmul %17, %19, %cst_22 {dimension_numbers = #tpu.dot_dimension_numbers<[1], [0], [0], [1], [0, 0, 1, 1], [], []>} : vector<128x32xf32>, vector<32x16xf32>, vector<128x16xf32> -> vector<128x16xf32>
    %21 = arith.addf %14, %20 : vector<128x16xf32>
    %c0_23 = arith.constant 0 : index
    %c0_24 = arith.constant 0 : index
    %22 = vector.load %arg4[%c0_23, %c0_24] : memref<128x1xf32, #tpu.memory_space<vmem>>, vector<128x1xf32>
    %23 = vector.broadcast %22 : vector<128x1xf32> to vector<128x16xf32>
    %24 = arith.addf %21, %23 : vector<128x16xf32>
    %cst_25 = arith.constant 0.000000e+00 : f32
    %25 = vector.broadcast %cst_25 : f32 to vector<128x16xf32>
    %26 = arith.maximumf %24, %25 : vector<128x16xf32>
    %c0_26 = arith.constant 0 : index
    %c0_27 = arith.constant 0 : index
    %27 = vector.load %arg5[%c0_26, %c0_27] : memref<64x128xf32, #tpu.memory_space<vmem>>, vector<64x128xf32>
    %cst_28 = arith.constant dense<0.000000e+00> : vector<64x16xf32>
    %28 = tpu.matmul %27, %26, %cst_28 {dimension_numbers = #tpu.dot_dimension_numbers<[1], [0], [0], [1], [0, 0, 1, 1], [], []>} : vector<64x128xf32>, vector<128x16xf32>, vector<64x16xf32> -> vector<64x16xf32>
    %c0_29 = arith.constant 0 : index
    %c0_30 = arith.constant 0 : index
    %29 = vector.load %arg6[%c0_29, %c0_30] : memref<16x8xf32, #tpu.memory_space<vmem>>, vector<16x8xf32>
    %cst_31 = arith.constant dense<0.000000e+00> : vector<64x8xf32>
    %30 = tpu.matmul %28, %29, %cst_31 {dimension_numbers = #tpu.dot_dimension_numbers<[1], [0], [0], [1], [0, 0, 1, 1], [], []>} : vector<64x16xf32>, vector<16x8xf32>, vector<64x8xf32> -> vector<64x8xf32>
    %cst_32 = arith.constant 0.000000e+00 : f32
    %31 = vector.broadcast %cst_32 : f32 to vector<64x8xf32>
    %32 = arith.maximumf %30, %31 : vector<64x8xf32>
    %c0_33 = arith.constant 0 : index
    %c0_34 = arith.constant 0 : index
    %33 = vector.load %arg7[%c0_33, %c0_34] : memref<16x64xf32, #tpu.memory_space<vmem>>, vector<16x64xf32>
    %cst_35 = arith.constant dense<0.000000e+00> : vector<16x8xf32>
    %34 = tpu.matmul %33, %32, %cst_35 {dimension_numbers = #tpu.dot_dimension_numbers<[1], [0], [0], [1], [0, 0, 1, 1], [], []>} : vector<16x64xf32>, vector<64x8xf32>, vector<16x8xf32> -> vector<16x8xf32>
    %c0_36 = arith.constant 0 : index
    %c0_37 = arith.constant 0 : index
    %35 = vector.load %arg8[%c0_36, %c0_37] : memref<8x2xf32, #tpu.memory_space<vmem>>, vector<8x2xf32>
    %cst_38 = arith.constant dense<0.000000e+00> : vector<16x2xf32>
    %36 = tpu.matmul %34, %35, %cst_38 {dimension_numbers = #tpu.dot_dimension_numbers<[1], [0], [0], [1], [0, 0, 1, 1], [], []>} : vector<16x8xf32>, vector<8x2xf32>, vector<16x2xf32> -> vector<16x2xf32>
    %cst_39 = arith.constant 0.000000e+00 : f32
    %37 = vector.broadcast %cst_39 : f32 to vector<16x2xf32>
    %38 = arith.maximumf %36, %37 : vector<16x2xf32>
    %39 = arith.negf %38 : vector<16x2xf32>
    %40 = math.exp %39 : vector<16x2xf32>
    %cst_40 = arith.constant 1.000000e+00 : f32
    %41 = vector.broadcast %cst_40 : f32 to vector<16x2xf32>
    %42 = arith.addf %41, %40 : vector<16x2xf32>
    %43 = arith.divf %41, %42 : vector<16x2xf32>
    %c0_41 = arith.constant 0 : index
    %c0_42 = arith.constant 0 : index
    %c0_43 = arith.constant 0 : index
    %44 = vector.load %arg9[%c0_41, %c0_42, %c0_43] : memref<1x16x2xf32, #tpu.memory_space<vmem>>, vector<1x16x2xf32>
    %45 = vector.shape_cast %44 : vector<1x16x2xf32> to vector<16x2xf32>
    %46 = vector.shape_cast %43 : vector<16x2xf32> to vector<1x16x2xf32>
    tpu.vector_store %arg9[%c0_41, %c0_42, %c0_43], %46 {strides = array<i32>} : memref<1x16x2xf32, #tpu.memory_space<vmem>>, vector<1x16x2xf32>,
    return
  }
  func.func @transform_0(%arg0: i32) -> (i32, i32, i32) {
    %c0_i32 = arith.constant 0 : i32
    %c0_i32_0 = arith.constant 0 : i32
    %c0_i32_1 = arith.constant 0 : i32
    return %arg0, %c0_i32, %c0_i32_0 : i32, i32, i32
  }
  func.func @transform_1(%arg0: i32) -> (i32, i32, i32) {
    %c0_i32 = arith.constant 0 : i32
    %c0_i32_0 = arith.constant 0 : i32
    %c0_i32_1 = arith.constant 0 : i32
    %c0_i32_2 = arith.constant 0 : i32
    return %c0_i32, %c0_i32_0, %c0_i32_1 : i32, i32, i32
  }
  func.func @transform_2(%arg0: i32) -> (i32, i32, i32) {
    %c0_i32 = arith.constant 0 : i32
    %c0_i32_0 = arith.constant 0 : i32
    %c0_i32_1 = arith.constant 0 : i32
    %c0_i32_2 = arith.constant 0 : i32
    return %c0_i32, %c0_i32_0, %c0_i32_1 : i32, i32, i32
  }
  func.func @transform_3(%arg0: i32) -> (i32, i32) {
    %c0_i32 = arith.constant 0 : i32
    %c0_i32_0 = arith.constant 0 : i32
    %c0_i32_1 = arith.constant 0 : i32
    return %c0_i32, %c0_i32_0 : i32, i32
  }
  func.func @transform_4(%arg0: i32) -> (i32, i32) {
    %c0_i32 = arith.constant 0 : i32
    %c0_i32_0 = arith.constant 0 : i32
    %c0_i32_1 = arith.constant 0 : i32
    return %c0_i32, %c0_i32_0 : i32, i32
  }
  func.func @transform_5(%arg0: i32) -> (i32, i32) {
    %c0_i32 = arith.constant 0 : i32
    %c0_i32_0 = arith.constant 0 : i32
    %c0_i32_1 = arith.constant 0 : i32
    return %c0_i32, %c0_i32_0 : i32, i32
  }
  func.func @transform_6(%arg0: i32) -> (i32, i32) {
    %c0_i32 = arith.constant 0 : i32
    %c0_i32_0 = arith.constant 0 : i32
    %c0_i32_1 = arith.constant 0 : i32
    return %c0_i32, %c0_i32_0 : i32, i32
  }
  func.func @transform_7(%arg0: i32) -> (i32, i32) {
    %c0_i32 = arith.constant 0 : i32
    %c0_i32_0 = arith.constant 0 : i32
    %c0_i32_1 = arith.constant 0 : i32
    return %c0_i32, %c0_i32_0 : i32, i32
  }
  func.func @transform_8(%arg0: i32) -> (i32, i32, i32) {
    %c0_i32 = arith.constant 0 : i32
    %c0_i32_0 = arith.constant 0 : i32
    %c0_i32_1 = arith.constant 0 : i32
    return %arg0, %c0_i32, %c0_i32_0 : i32, i32, i32
  }
}

</mosaic_0001>

<bundles_post_ra>
// kernel: forward.1
= control target key start
LH: loop header
LB: loop body
LE: loop exit
PB: predicated region body
PF: predicated region fallthrough
CT: control target
= control target key end

     0   :  { %13 = vsyncpa [#allocation3], 0  ;;  %s2048_s0 = inlined_call_operand.vmem [shape: f32[2,128,32], index: 0, kind: input, shape index: {}]   ;;  %s2049_s1 = inlined_call_operand.hbm [shape: f32[3,128,128], index: 1, kind: input, shape index: {}]   ;;  %s2050_s2 = inlined_call_operand.vmem [shape: f32[3,32,16], index: 2, kind: input, shape index: {}]   ;;  %s2051_s3 = inlined_call_operand.vmem [shape: f32[128,1], index: 3, kind: input, shape index: {}]   ;;  %s2052_s4 = inlined_call_operand.hbm [shape: f32[64,128], index: 4, kind: input, shape index: {}]   ;;  %s2053_s5 = inlined_call_operand.vmem [shape: f32[16,8], index: 5, kind: input, shape index: {}]   ;;  %s2054_s6 = inlined_call_operand.vmem [shape: f32[16,64], index: 6, kind: input, shape index: {}]   ;;  %s2055_s7 = inlined_call_operand.vmem [shape: f32[8,2], index: 7, kind: input, shape index: {}]   ;;  %s2056_s8 = inlined_call_operand.vmem [shape: f32[2,16,2], index: 8, kind: output, shape index: {}]  }
   0x1   :  { %14 = vsyncpa [#allocation5], 0  ;;  %s1663_s27 = smov 0  }
   0x2 LB: > { %s235_s30 = sshll.u32 %s2049_s1, 4  ;;  %s1407_s9 = sadd.s32 4294967295, %s1611_s27   ;;  %s1611_s27 = sphi %s1663_s27, %s20_s27   ;;  %s236_s30 = int_to_ptr.hbm [resolvable:$true] %s235_s30 }
   0x3   : > { %p1409_p0 = scmp.ge.s32.totalorder %s1611_s27, 1  ;;  %p224_p1 = scmp.lt.s32.totalorder %s1611_s27, 3 }
   0x4   : > { %p1509_p2 = scmp.eq.s32.totalorder %s1407_s9, 0  ;;  %s1613_s11 = smov [#allocation2]  }
   0x5   : > { %p1674_p3 = pnand %p1409_p0, %p224_p1  ;;  %s237_s12 = sshll.u32 %s1613_s11, 4  ;;  %s238_s12 = int_to_ptr.vmem [resolvable:$true] %s237_s12 }
   0x6   : > { %s255_s15 = sshll.u32 %s2052_s4, 4  ;;  %s1614_s16 = smov [#allocation4]   ;;  %s256_s15 = int_to_ptr.hbm [resolvable:$true] %s255_s15 }
   0x7   : > { %p1502_p4 = pneg %p1674_p3  ;;  %s257_s17 = sshll.u32 %s1614_s16, 4  ;;  %s258_s17 = int_to_ptr.vmem [resolvable:$true] %s257_s17 }
   0x8   : > { %s1615_s18 = smov 128   ;;  %s1616_s19 = smov 8  }
   0x9   : > { %p1503_p5 = pnand %p1509_p2, %p1502_p4  ;;  %290 = sbr.rel (%p1674_p3) target bundleno = 1345 (0x541), region = 52 }
   0xb   : > { %1505 = dma.hbm_to_vmem [thread:$0]  (!%p1503_p5), %s236_s30, 6144, %s238_s12, [#allocation3], %s1615_s18, %s1615_s18, %s1616_s19  }
   0xc   : > { %1508 = dma.hbm_to_vmem [thread:$0]  (!%p1503_p5), %s256_s15, 1024, %s258_s17, [#allocation5], %s1615_s18, %s1615_s18, %s1616_s19  }
   0xe   : > { %1602 = dma.done.wait (%p1509_p2), [#allocation3], 6144  }
   0xf   : > { %1604 = vsyncadd (%p1509_p2), [#allocation3], 4294961152 }
  0x10   : > { %1606 = dma.done.wait (%p1509_p2), [#allocation5], 1024  }
  0x11   : > { %1608 = vsyncadd (%p1509_p2), [#allocation5], 4294966272  ;;  %p330_p6 = scmp.lt.s32.totalorder %s1407_s9, 1  ;;  %v356_v16 = vld [vmem:[#allocation2] sm:$0xff]  ;;  %v357_v18 = vld [vmem:[#allocation2 + $0x8] sm:$0xff]  ;;  %vm528_vm0 = vcmask 261120  }
  0x12   : > { %v442_v17 = vld [vmem:[#allocation2 + $0x80] sm:$0xff]  ;;  %v443_v19 = vld [vmem:[#allocation2 + $0x88] sm:$0xff]  ;;  %v358_v20 = vld [vmem:[#allocation2 + $0x10] sm:$0xff]  ;;  %vm1150_vm1 = vcmask 130048   ;;  %vm1226_vm2 = vcmask 523264   ;;  %vm1257_vm3 = vcmask 64512  }
  0x13   : > { %s2059_s9 = smov (!%p330_p6, %s1407_s9), 1  ;;  %v444_v21 = vld [vmem:[#allocation2 + $0x90] sm:$0xff]  ;;  %v359_v22 = vld [vmem:[#allocation2 + $0x18] sm:$0xff]  ;;  %v360_v24 = vld [vmem:[#allocation2 + $0x20] sm:$0xff]  ;;  %vm1327_vm7 = vcmask 15360  }
  0x14   : > { %s1492_s20 = sshll.u32 %s2059_s9, 7  ;;  %v445_v23 = vld [vmem:[#allocation2 + $0x98] sm:$0xff]  ;;  %v446_v25 = vld [vmem:[#allocation2 + $0xa0] sm:$0xff]  ;;  %v361_v26 = vld [vmem:[#allocation2 + $0x28] sm:$0xff]  ;;  %s1493_s10 = sshll.u32 %s2059_s9, 4 }
  0x15   : > { %s1696_s23 = scalar_lea.vmem %s2048_s0, %s1492_s20  ;;  %v447_v27 = vld [vmem:[#allocation2 + $0xa8] sm:$0xff]  ;;  %v362_v28 = vld [vmem:[#allocation2 + $0x30] sm:$0xff]  ;;  %v363_v30 = vld [vmem:[#allocation2 + $0x38] sm:$0xff]  ;;  %s339_s13 = scalar_lea.vmem %s2056_s8, %s1493_s10 }
  0x16   : > { %v1699_v0 = vld [vmem:[%s1696_s23 + $0x78] sm:$0xff]  ;;  %v1702_v1 = vld [vmem:[%s1696_s23 + $0x70] sm:$0xff]  ;;  %v1707_v2 = vld [vmem:[%s1696_s23 + $0x68] sm:$0xff] }
  0x17   : > { %372 = vmatpush.msra.mxu0 %v1699_v0  ;;  %458 = vmatpush.msra.mxu1 %v1699_v0  ;;  %v1712_v3 = vld [vmem:[%s1696_s23 + $0x60] sm:$0xff]  ;;  %v1717_v4 = vld [vmem:[%s1696_s23 + $0x58] sm:$0xff]  ;;  %v1722_v5 = vld [vmem:[%s1696_s23 + $0x50] sm:$0xff] }
  0x18   : > { %v1727_v6 = vld [vmem:[%s1696_s23 + $0x48] sm:$0xff]  ;;  %v1732_v7 = vld [vmem:[%s1696_s23 + $0x40] sm:$0xff]  ;;  %v1737_v8 = vld [vmem:[%s1696_s23 + $0x38] sm:$0xff] }
  0x19   : > { %373 = vmatpush.msra.mxu0 %v1702_v1  ;;  %459 = vmatpush.msra.mxu1 %v1702_v1  ;;  %v1742_v9 = vld [vmem:[%s1696_s23 + $0x30] sm:$0xff]  ;;  %v1747_v10 = vld [vmem:[%s1696_s23 + $0x28] sm:$0xff]  ;;  %v1752_v11 = vld [vmem:[%s1696_s23 + $0x20] sm:$0xff] }
  0x1a   : > { %v1757_v12 = vld [vmem:[%s1696_s23 + $0x18] sm:$0xff]  ;;  %v1762_v13 = vld [vmem:[%s1696_s23 + $0x10] sm:$0xff]  ;;  %v1767_v14 = vld [vmem:[%s1696_s23 + $0x8] sm:$0xff] }
  0x1b   : > { %374 = vmatpush.msra.mxu0 %v1707_v2  ;;  %460 = vmatpush.msra.mxu1 %v1707_v2  ;;  %v1772_v15 = vld [vmem:[%s1696_s23] sm:$0xff]  ;;  %v448_v29 = vld [vmem:[#allocation2 + $0xb0] sm:$0xff]  ;;  %v449_v31 = vld [vmem:[#allocation2 + $0xb8] sm:$0xff] }
  0x1c   : > { %v364_v32 = vld [vmem:[#allocation2 + $0x40] sm:$0xff]  ;;  %v365_v34 = vld [vmem:[#allocation2 + $0x48] sm:$0xff]  ;;  %v366_v36 = vld [vmem:[#allocation2 + $0x50] sm:$0xff] }
  0x1d   : > { %375 = vmatpush.msra.mxu0 %v1712_v3  ;;  %461 = vmatpush.msra.mxu1 %v1712_v3  ;;  %v450_v33 = vld [vmem:[#allocation2 + $0xc0] sm:$0xff]  ;;  %v451_v35 = vld [vmem:[#allocation2 + $0xc8] sm:$0xff]  ;;  %v452_v37 = vld [vmem:[#allocation2 + $0xd0] sm:$0xff] }
  0x1e   : > { %v1423_v38 = vld [vmem:[%s2050_s2 + $0x38] sm:$0xff]  ;;  %v1422_v42 = vld [vmem:[%s2050_s2 + $0x30] sm:$0xff]  ;;  %v1421_v44 = vld [vmem:[%s2050_s2 + $0x28] sm:$0xff] }
  0x1f   : > { %376 = vmatpush.msra.mxu0 %v1717_v4  ;;  %462 = vmatpush.msra.mxu1 %v1717_v4  ;;  %v440_v39 = vld [vmem:[%s2050_s2 + $0x18] sm:$0xff]  ;;  %v439_v43 = vld [vmem:[%s2050_s2 + $0x10] sm:$0xff]  ;;  %v438_v45 = vld [vmem:[%s2050_s2 + $0x8] sm:$0xff] }
  0x20   : > { %589 = vmatpush.msra.mxu2 %v1423_v38  ;;  %702 = vmatpush.msra.mxu3 %v440_v39  ;;  %v367_v40 = vld [vmem:[#allocation2 + $0x58] sm:$0xff]  ;;  %v1420_v46 = vld [vmem:[%s2050_s2 + $0x20] sm:$0xff]  ;;  %v369_v50 = vld [vmem:[#allocation2 + $0x68] sm:$0xff] }
  0x21   : > { %377 = vmatpush.msra.mxu0 %v1722_v5  ;;  %463 = vmatpush.msra.mxu1 %v1722_v5  ;;  %v453_v41 = vld [vmem:[#allocation2 + $0xd8] sm:$0xff]  ;;  %v437_v47 = vld [vmem:[%s2050_s2] sm:$0xff]  ;;  %v455_v51 = vld [vmem:[#allocation2 + $0xe8] sm:$0xff] }
  0x22   : > { %590 = vmatpush.msra.mxu2 %v1422_v42  ;;  %703 = vmatpush.msra.mxu3 %v439_v43  ;;  %v368_v48 = vld [vmem:[#allocation2 + $0x60] sm:$0xff]  ;;  %v370_v52 = vld [vmem:[#allocation2 + $0x70] sm:$0xff]  ;;  %v371_v54 = vld [vmem:[#allocation2 + $0x78] sm:$0xff] }
  0x23   : > { %378 = vmatpush.msra.mxu0 %v1727_v6  ;;  %464 = vmatpush.msra.mxu1 %v1727_v6  ;;  %v454_v49 = vld [vmem:[#allocation2 + $0xe0] sm:$0xff]  ;;  %v456_v53 = vld [vmem:[#allocation2 + $0xf0] sm:$0xff]  ;;  %v457_v55 = vld [vmem:[#allocation2 + $0xf8] sm:$0xff] }
  0x24   : > { %591 = vmatpush.msra.mxu2 %v1421_v44  ;;  %704 = vmatpush.msra.mxu3 %v438_v45  ;;  %v761_v39 = vld [vmem:[#allocation2 + $0x128] sm:$0xff]  ;;  %v762_v42 = vld [vmem:[#allocation2 + $0x130] sm:$0xff]  ;;  %v763_v45 = vld [vmem:[#allocation2 + $0x138] sm:$0xff] }
  0x25   : > { %379 = vmatpush.msra.mxu0 %v1732_v7  ;;  %465 = vmatpush.msra.mxu1 %v1732_v7 }
  0x26   : > { %592 = vmatpush.msra.mxu2 %v1420_v46  ;;  %705 = vmatpush.msra.mxu3 %v437_v47 }
  0x27   : > { %380 = vmatpush.msra.mxu0 %v1737_v8  ;;  %466 = vmatpush.msra.mxu1 %v1737_v8 }
  0x28   : > { %772 = vmatpush.msrb.mxu2 %v1699_v0 }
  0x29   : > { %381 = vmatpush.msra.mxu0 %v1742_v9  ;;  %467 = vmatpush.msra.mxu1 %v1742_v9 }
  0x2a   : > { %773 = vmatpush.msrb.mxu2 %v1702_v1 }
  0x2b   : > { %382 = vmatpush.msra.mxu0 %v1747_v10  ;;  %468 = vmatpush.msra.mxu1 %v1747_v10 }
  0x2c   : > { %774 = vmatpush.msrb.mxu2 %v1707_v2 }
  0x2d   : > { %383 = vmatpush.msra.mxu0 %v1752_v11  ;;  %469 = vmatpush.msra.mxu1 %v1752_v11 }
  0x2e   : > { %775 = vmatpush.msrb.mxu2 %v1712_v3 }
  0x2f   : > { %384 = vmatpush.msra.mxu0 %v1757_v12  ;;  %470 = vmatpush.msra.mxu1 %v1757_v12 }
  0x30   : > { %776 = vmatpush.msrb.mxu2 %v1717_v4 }
  0x31   : > { %385 = vmatpush.msra.mxu0 %v1762_v13  ;;  %471 = vmatpush.msra.mxu1 %v1762_v13 }
  0x32   : > { %777 = vmatpush.msrb.mxu2 %v1722_v5 }
  0x33   : > { %386 = vmatpush.msra.mxu0 %v1767_v14  ;;  %472 = vmatpush.msra.mxu1 %v1767_v14 }
  0x34   : > { %778 = vmatpush.msrb.mxu2 %v1727_v6 }
  0x35   : > { %387 = vmatpush.msra.mxu0 %v1772_v15  ;;  %473 = vmatpush.msra.mxu1 %v1772_v15 }
  0x36   : > { %388 = vmatmul.f32.vlgmr.msra.gmra.mxu0 %v356_v16  ;;  %474 = vmatmul.f32.vlgmr.msra.gmra.mxu1 %v442_v17 }
  0x37   : > { %779 = vmatpush.msrb.mxu2 %v1732_v7 }
  0x39   : > { %780 = vmatpush.msrb.mxu2 %v1737_v8 }
  0x3b   : > { %781 = vmatpush.msrb.mxu2 %v1742_v9 }
  0x3d   : > { %782 = vmatpush.msrb.mxu2 %v1747_v10 }
  0x3e   : > { %391 = vmatmul.f32.gmra.mxu0 %v357_v18  ;;  %477 = vmatmul.f32.gmra.mxu1 %v443_v19 }
  0x3f   : > { %783 = vmatpush.msrb.mxu2 %v1752_v11 }
  0x41   : > { %784 = vmatpush.msrb.mxu2 %v1757_v12 }
  0x43   : > { %785 = vmatpush.msrb.mxu2 %v1762_v13 }
  0x45   : > { %786 = vmatpush.msrb.mxu2 %v1767_v14 }
  0x46   : > { %394 = vmatmul.f32.gmra.mxu0 %v358_v20  ;;  %480 = vmatmul.f32.gmra.mxu1 %v444_v21 }
  0x47   : > { %787 = vmatpush.msrb.mxu2 %v1772_v15 }
  0x4e   : > { %397 = vmatmul.f32.gmra.mxu0 %v359_v22  ;;  %483 = vmatmul.f32.gmra.mxu1 %v445_v23 }
  0x56   : > { %400 = vmatmul.f32.gmra.mxu0 %v360_v24  ;;  %486 = vmatmul.f32.gmra.mxu1 %v446_v25  ;;  %v756_v24 = vld [vmem:[#allocation2 + $0x100] sm:$0xff] }
  0x5e   : > { %403 = vmatmul.f32.gmra.mxu0 %v361_v26  ;;  %489 = vmatmul.f32.gmra.mxu1 %v447_v27  ;;  %v757_v27 = vld [vmem:[#allocation2 + $0x108] sm:$0xff] }
  0x66   : > { %406 = vmatmul.f32.gmra.mxu0 %v362_v28  ;;  %492 = vmatmul.f32.gmra.mxu1 %v448_v29 }
  0x6e   : > { %409 = vmatmul.f32.gmra.mxu0 %v363_v30  ;;  %495 = vmatmul.f32.gmra.mxu1 %v449_v31  ;;  %v758_v30 = vld [vmem:[#allocation2 + $0x110] sm:$0xff] }
  0x76   : > { %412 = vmatmul.f32.gmra.mxu0 %v364_v32  ;;  %498 = vmatmul.f32.gmra.mxu1 %v450_v33  ;;  %v759_v33 = vld [vmem:[#allocation2 + $0x118] sm:$0xff] }
  0x7e   : > { %415 = vmatmul.f32.gmra.mxu0 %v365_v34  ;;  %501 = vmatmul.f32.gmra.mxu1 %v451_v35 }
  0x86   : > { %418 = vmatmul.f32.gmra.mxu0 %v366_v36  ;;  %504 = vmatmul.f32.gmra.mxu1 %v452_v37  ;;  %v760_v36 = vld [vmem:[#allocation2 + $0x120] sm:$0xff] }
  0x8e   : > { %421 = vmatmul.f32.gmra.mxu0 %v367_v40  ;;  %507 = vmatmul.f32.gmra.mxu1 %v453_v41 }
  0x96   : > { %424 = vmatmul.f32.gmra.mxu0 %v368_v48  ;;  %510 = vmatmul.f32.gmra.mxu1 %v454_v49  ;;  %v764_v48 = vld [vmem:[#allocation2 + $0x140] sm:$0xff] }
  0x9e   : > { %427 = vmatmul.f32.gmra.mxu0 %v369_v50  ;;  %513 = vmatmul.f32.gmra.mxu1 %v455_v51 }
  0xa6   : > { %430 = vmatmul.f32.gmra.mxu0 %v370_v52  ;;  %516 = vmatmul.f32.gmra.mxu1 %v456_v53  ;;  %v1459_v52 = vld [vmem:[%s2050_s2 + $0x58] sm:$0xff]  ;;  %v765_v53 = vld [vmem:[#allocation2 + $0x148] sm:$0xff] }
  0xa7   : > { %902 = vmatpush.msrb.mxu3 %v1459_v52  ;;  %v975_v52 = vld [vmem:[%s2051_s3 + $0x20] sm:$0xff] }
  0xae   : > { %433 = vmatmul.f32.gmra.mxu0 %v371_v54  ;;  %519 = vmatmul.f32.gmra.mxu1 %v457_v55 }
  0xb3   : > { %v389_v56 = vpop.f32.mrf.mxu0  ;;  %v475_v57 = vpop.f32.mrf.mxu1 }
  0xb4   : > { %1424 = vmatmul.msk.f32.vlgmr.msra.gmra.mxu2 %vm528_vm0, %v475_v57  ;;  %1440 = vmatmul.msk.f32.vlgmr.msra.gmra.mxu3 %vm528_vm0, %v389_v56  ;;  %v986_v57 = vld [vmem:[%s2051_s3 + $0x78] sm:$0xff] }
  0xbb   : > { %v392_v58 = vpop.f32.mrf.mxu0  ;;  %v478_v59 = vpop.f32.mrf.mxu1 }
  0xbc   : > { %1425 = vmatmul.msk.f32.gmra.mxu2 %vm528_vm0, %v478_v59  ;;  %1441 = vmatmul.msk.f32.gmra.mxu3 %vm528_vm0, %v392_v58  ;;  %v766_v58 = vld [vmem:[#allocation2 + $0x150] sm:$0xff]  ;;  %v1617_v59 = vmov 0  }
  0xbd   : > { %1526 = vset.pattern.permute.xlu0 %v1617_v59  ;;  %1527 = vset.pattern.permute.xlu1 %v1617_v59 }
  0xbe   : > { %1064 = vperm.xlu0 %1526, %v986_v57   ;;  %1528 = vset.pattern.permute.xlu2 %v1617_v59 }
  0xc3   : > { %v395_v60 = vpop.f32.mrf.mxu0  ;;  %v481_v61 = vpop.f32.mrf.mxu1 }
  0xc4   : > { %1426 = vmatmul.msk.f32.gmra.mxu2 %vm528_vm0, %v481_v61  ;;  %1442 = vmatmul.msk.f32.gmra.mxu3 %vm528_vm0, %v395_v60 }
  0xcb   : > { %v398_v62 = vpop.f32.mrf.mxu0  ;;  %v484_v63 = vpop.f32.mrf.mxu1 }
  0xcc   : > { %1427 = vmatmul.msk.f32.gmra.mxu2 %vm528_vm0, %v484_v63  ;;  %1443 = vmatmul.msk.f32.gmra.mxu3 %vm528_vm0, %v398_v62  ;;  %v985_v63 = vld [vmem:[%s2051_s3 + $0x70] sm:$0xff] }
  0xcd   : > { %1059 = vperm.xlu0 %1526, %v985_v63  }
  0xd3   : > { %v401_v0 = vpop.f32.mrf.mxu0  ;;  %v487_v1 = vpop.f32.mrf.mxu1 }
  0xd4   : > { %1428 = vmatmul.msk.f32.gmra.mxu2 %vm528_vm0, %v487_v1  ;;  %1444 = vmatmul.msk.f32.gmra.mxu3 %vm528_vm0, %v401_v0  ;;  %v767_v0 = vld [vmem:[#allocation2 + $0x158] sm:$0xff] }
  0xdb   : > { %v404_v2 = vpop.f32.mrf.mxu0  ;;  %v490_v3 = vpop.f32.mrf.mxu1 }
  0xdc   : > { %1429 = vmatmul.msk.f32.gmra.mxu2 %vm528_vm0, %v490_v3  ;;  %1445 = vmatmul.msk.f32.gmra.mxu3 %vm528_vm0, %v404_v2 }
  0xe3   : > { %v407_v4 = vpop.f32.mrf.mxu0  ;;  %v493_v5 = vpop.f32.mrf.mxu1 }
  0xe4   : > { %1430 = vmatmul.msk.f32.gmra.mxu2 %vm528_vm0, %v493_v5  ;;  %1446 = vmatmul.msk.f32.gmra.mxu3 %vm528_vm0, %v407_v4  ;;  %v980_v4 = vld [vmem:[%s2051_s3 + $0x48] sm:$0xff]  ;;  %v1458_v5 = vld [vmem:[%s2050_s2 + $0x50] sm:$0xff] }
  0xe5   : > { %903 = vmatpush.msrb.mxu3 %v1458_v5  ;;  %1034 = vperm.xlu0 %1526, %v980_v4  }
  0xeb   : > { %v410_v6 = vpop.f32.mrf.mxu0  ;;  %v496_v7 = vpop.f32.mrf.mxu1 }
  0xec   : > { %1431 = vmatmul.msk.f32.gmra.mxu2 %vm528_vm0, %v496_v7  ;;  %1447 = vmatmul.msk.f32.gmra.mxu3 %vm528_vm0, %v410_v6  ;;  %v1457_v6 = vld [vmem:[%s2050_s2 + $0x48] sm:$0xff]  ;;  %v768_v7 = vld [vmem:[#allocation2 + $0x160] sm:$0xff] }
  0xed   : > { %904 = vmatpush.msrb.mxu3 %v1457_v6 }
  0xf3   : > { %v413_v8 = vpop.f32.mrf.mxu0  ;;  %v499_v9 = vpop.f32.mrf.mxu1 }
  0xf4   : > { %1432 = vmatmul.msk.f32.gmra.mxu2 %vm528_vm0, %v499_v9  ;;  %1448 = vmatmul.msk.f32.gmra.mxu3 %vm528_vm0, %v413_v8  ;;  %v1456_v8 = vld [vmem:[%s2050_s2 + $0x40] sm:$0xff] }
  0xf5   : > { %905 = vmatpush.msrb.mxu3 %v1456_v8 }
  0xfb   : > { %v416_v10 = vpop.f32.mrf.mxu0  ;;  %v502_v11 = vpop.f32.mrf.mxu1 }
  0xfc   : > { %1433 = vmatmul.msk.f32.gmra.mxu2 %vm528_vm0, %v502_v11  ;;  %1449 = vmatmul.msk.f32.gmra.mxu3 %vm528_vm0, %v416_v10 }
 0x103   : > { %v419_v12 = vpop.f32.mrf.mxu0  ;;  %v505_v13 = vpop.f32.mrf.mxu1 }
 0x104   : > { %1434 = vmatmul.msk.f32.gmra.mxu2 %vm528_vm0, %v505_v13  ;;  %1450 = vmatmul.msk.f32.gmra.mxu3 %vm528_vm0, %v419_v12  ;;  %v984_v12 = vld [vmem:[%s2051_s3 + $0x68] sm:$0xff]  ;;  %v977_v13 = vld [vmem:[%s2051_s3 + $0x30] sm:$0xff] }
 0x105   : > { %1054 = vperm.xlu1 %1527, %v984_v12   ;;  %1019 = vperm.xlu0 %1526, %v977_v13  }
 0x10b   : > { %v422_v14 = vpop.f32.mrf.mxu0  ;;  %v508_v15 = vpop.f32.mrf.mxu1 }
 0x10c   : > { %1435 = vmatmul.msk.f32.gmra.mxu2 %vm528_vm0, %v508_v15  ;;  %1451 = vmatmul.msk.f32.gmra.mxu3 %vm528_vm0, %v422_v14  ;;  %v769_v14 = vld [vmem:[#allocation2 + $0x168] sm:$0xff] }
 0x113   : > { %v425_v16 = vpop.f32.mrf.mxu0  ;;  %v511_v17 = vpop.f32.mrf.mxu1 }
 0x114   : > { %1436 = vmatmul.msk.f32.gmra.mxu2 %vm528_vm0, %v511_v17  ;;  %1452 = vmatmul.msk.f32.gmra.mxu3 %vm528_vm0, %v425_v16 }
 0x11b   : > { %v428_v18 = vpop.f32.mrf.mxu0  ;;  %v514_v19 = vpop.f32.mrf.mxu1 }
 0x11c   : > { %1437 = vmatmul.msk.f32.gmra.mxu2 %vm528_vm0, %v514_v19  ;;  %1453 = vmatmul.msk.f32.gmra.mxu3 %vm528_vm0, %v428_v18  ;;  %v983_v18 = vld [vmem:[%s2051_s3 + $0x60] sm:$0xff]  ;;  %v974_v19 = vld [vmem:[%s2051_s3 + $0x18] sm:$0xff] }
 0x11d   : > { %1049 = vperm.xlu1 %1527, %v983_v18   ;;  %1004 = vperm.xlu0 %1526, %v974_v19  }
 0x123   : > { %v431_v20 = vpop.f32.mrf.mxu0  ;;  %v517_v21 = vpop.f32.mrf.mxu1 }
 0x124   : > { %1438 = vmatmul.msk.f32.gmra.mxu2 %vm528_vm0, %v517_v21  ;;  %1454 = vmatmul.msk.f32.gmra.mxu3 %vm528_vm0, %v431_v20  ;;  %v770_v20 = vld [vmem:[#allocation2 + $0x170] sm:$0xff] }
 0x12b   : > { %v434_v22 = vpop.f32.mrf.mxu0  ;;  %v520_v23 = vpop.f32.mrf.mxu1 }
 0x12c   : > { %1439 = vmatmul.msk.f32.gmra.mxu2 %vm528_vm0, %v520_v23  ;;  %1455 = vmatmul.msk.f32.gmra.mxu3 %vm528_vm0, %v434_v22 }
 0x134   : > { %788 = vmatmul.f32.vlgmr.msrb.gmra.mxu2 %v756_v24  ;;  %v982_v24 = vld [vmem:[%s2051_s3 + $0x58] sm:$0xff] }
 0x135   : > { %1044 = vperm.xlu2 %1528, %v982_v24  }
 0x137   : > { %v1850_v25 = vpop.f32.mrf.mxu2  ;;  %v1852_v26 = vpop.f32.mrf.mxu3 }
 0x138   : > { %v708_v8 = vadd.f32 %v1852_v26, %v1850_v25 }
 0x13c   : > { %791 = vmatmul.f32.gmra.mxu2 %v757_v27  ;;  %v979_v27 = vld [vmem:[%s2051_s3 + $0x40] sm:$0xff] }
 0x13d   : > { %1029 = vperm.xlu1 %1527, %v979_v27  }
 0x13f   : > { %v1854_v28 = vpop.f32.mrf.mxu2  ;;  %v1856_v29 = vpop.f32.mrf.mxu3 }
 0x140   : > { %v711_v12 = vadd.f32 %v1856_v29, %v1854_v28 }
 0x144   : > { %794 = vmatmul.f32.gmra.mxu2 %v758_v30  ;;  %v971_v30 = vld [vmem:[%s2051_s3] sm:$0xff] }
 0x145   : > { %989 = vperm.xlu0 %1526, %v971_v30  }
 0x147   : > { %v1858_v31 = vpop.f32.mrf.mxu2  ;;  %v1860_v32 = vpop.f32.mrf.mxu3 }
 0x14c   : > { %797 = vmatmul.f32.gmra.mxu2 %v759_v33  ;;  %v771_v33 = vld [vmem:[#allocation2 + $0x178] sm:$0xff] }
 0x14f   : > { %v1862_v34 = vpop.f32.mrf.mxu2  ;;  %v1864_v35 = vpop.f32.mrf.mxu3 }
 0x150   : > { %v717_v19 = vadd.f32 %v1864_v35, %v1862_v34 }
 0x154   : > { %800 = vmatmul.f32.gmra.mxu2 %v760_v36 }
 0x157   : > { %v1866_v37 = vpop.f32.mrf.mxu2  ;;  %v1868_v38 = vpop.f32.mrf.mxu3 }
 0x158   : > { %v720_v26 = vadd.f32 %v1868_v38, %v1866_v37 }
 0x15c   : > { %803 = vmatmul.f32.gmra.mxu2 %v761_v39  ;;  %v981_v39 = vld [vmem:[%s2051_s3 + $0x50] sm:$0xff] }
 0x15d   : > { %1039 = vperm.xlu2 %1528, %v981_v39  }
 0x15f   : > { %v1870_v40 = vpop.f32.mrf.mxu2  ;;  %v1872_v41 = vpop.f32.mrf.mxu3 }
 0x160   : > { %v723_v29 = vadd.f32 %v1872_v41, %v1870_v40  ;;  %v1065_v41 = vpop.permute.xlu0 %1064 }
 0x164   : > { %806 = vmatmul.f32.gmra.mxu2 %v762_v42  ;;  %v976_v42 = vld [vmem:[%s2051_s3 + $0x28] sm:$0xff] }
 0x165   : > { %1014 = vperm.xlu1 %1527, %v976_v42  }
 0x167   : > { %v1874_v43 = vpop.f32.mrf.mxu2  ;;  %v1876_v44 = vpop.f32.mrf.mxu3 }
 0x16c   : > { %809 = vmatmul.f32.gmra.mxu2 %v763_v45 }
 0x16f   : > { %v1878_v46 = vpop.f32.mrf.mxu2  ;;  %v1880_v47 = vpop.f32.mrf.mxu3 }
 0x170   : > { %v729_v35 = vadd.f32 %v1880_v47, %v1878_v46 }
 0x174   : > { %812 = vmatmul.f32.gmra.mxu2 %v764_v48  ;;  %v978_v48 = vld [vmem:[%s2051_s3 + $0x38] sm:$0xff] }
 0x175   : > { %1024 = vperm.xlu2 %1528, %v978_v48  }
 0x177   : > { %v618_v49 = vpop.f32.mrf.mxu2  ;;  %v731_v50 = vpop.f32.mrf.mxu3 }
 0x178   : > { %v1882_v51 = vadd.f32 %v731_v50, %v618_v49  ;;  %v973_v49 = vld [vmem:[%s2051_s3 + $0x10] sm:$0xff] }
 0x179   : > { %999 = vperm.xlu1 %1527, %v973_v49  }
 0x17c   : > { %815 = vmatmul.f32.gmra.mxu2 %v765_v53 }
 0x17d   : > { %1009 = vperm.xlu2 %1528, %v975_v52  }
 0x17f   : > { %v621_v54 = vpop.f32.mrf.mxu2  ;;  %v734_v55 = vpop.f32.mrf.mxu3 }
 0x180   : > { %v1887_v56 = vadd.f32 %v734_v55, %v621_v54  ;;  %v972_v54 = vld [vmem:[%s2051_s3 + $0x8] sm:$0xff] }
 0x184   : > { %818 = vmatmul.f32.gmra.mxu2 %v766_v58 }
 0x185   : > { %994 = vperm.xlu2 %1528, %v972_v54  }
 0x187   : > { %v624_v60 = vpop.f32.mrf.mxu2  ;;  %v737_v61 = vpop.f32.mrf.mxu3 }
 0x188   : > { %v1892_v62 = vadd.f32 %v737_v61, %v624_v60 }
 0x18c   : > { %821 = vmatmul.f32.gmra.mxu2 %v767_v0 }
 0x18f   : > { %v627_v1 = vpop.f32.mrf.mxu2  ;;  %v740_v2 = vpop.f32.mrf.mxu3 }
 0x190   : > { %v1897_v3 = vadd.f32 %v740_v2, %v627_v1  ;;  %v1045_v49 = vpop.permute.xlu2 %1044 }
 0x194   : > { %824 = vmatmul.f32.gmra.mxu2 %v768_v7 }
 0x197   : > { %v630_v9 = vpop.f32.mrf.mxu2  ;;  %v743_v10 = vpop.f32.mrf.mxu3 }
 0x198   : > { %v1911_v11 = vadd.f32 %v743_v10, %v630_v9 }
 0x19c   : > { %827 = vmatmul.f32.gmra.mxu2 %v769_v14 }
 0x19f   : > { %v633_v15 = vpop.f32.mrf.mxu2  ;;  %v746_v16 = vpop.f32.mrf.mxu3 }
 0x1a0   : > { %v1919_v17 = vadd.f32 %v746_v16, %v633_v15  ;;  %v714_v15 = vadd.f32 %v1860_v32, %v1858_v31  ;;  %v726_v32 = vadd.f32 %v1876_v44, %v1874_v43 }
 0x1a4   : > { %830 = vmatmul.f32.gmra.mxu2 %v770_v20 }
 0x1a7   : > { %v636_v21 = vpop.f32.mrf.mxu2  ;;  %v749_v22 = vpop.f32.mrf.mxu3 }
 0x1a8   : > { %v1927_v23 = vadd.f32 %v749_v22, %v636_v21 }
 0x1ac   : > { %833 = vmatmul.f32.gmra.mxu2 %v771_v33 }
 0x1af   : > { %v1938_v36 = vpop.f32.mrf.mxu2  ;;  %v752_v7 = vpop.f32.mrf.mxu3 }
 0x1b0   : > { %v753_v46 = vadd.f32 %v752_v7, %v1938_v36 }
 0x1b7   : > { %v789_v45 = vpop.f32.mrf.mxu2  ;;  %v1040_v52 = vpop.permute.xlu2 %1039 }
 0x1b8   : > { %1460 = vmatmul.msk.f32.vlgmr.msrb.gmra.mxu3 %vm528_vm0, %v789_v45  ;;  %v1055_v45 = vpop.permute.xlu1 %1054 }
 0x1bf   : > { %v792_v50 = vpop.f32.mrf.mxu2 }
 0x1c0   : > { %1461 = vmatmul.msk.f32.gmra.mxu3 %vm528_vm0, %v792_v50  ;;  %v1060_v50 = vpop.permute.xlu0 %1059  ;;  %v1050_v44 = vpop.permute.xlu1 %1049 }
 0x1c7   : > { %v795_v53 = vpop.f32.mrf.mxu2 }
 0x1c8   : > { %1462 = vmatmul.msk.f32.gmra.mxu3 %vm528_vm0, %v795_v53  ;;  %v1035_v53 = vpop.permute.xlu0 %1034 }
 0x1cf   : > { %v798_v55 = vpop.f32.mrf.mxu2 }
 0x1d0   : > { %1463 = vmatmul.msk.f32.gmra.mxu3 %vm528_vm0, %v798_v55 }
 0x1d7   : > { %v801_v57 = vpop.f32.mrf.mxu2 }
 0x1d8   : > { %1464 = vmatmul.msk.f32.gmra.mxu3 %vm528_vm0, %v801_v57 }
 0x1df   : > { %v804_v58 = vpop.f32.mrf.mxu2 }
 0x1e0   : > { %1465 = vmatmul.msk.f32.gmra.mxu3 %vm528_vm0, %v804_v58 }
 0x1e7   : > { %v807_v59 = vpop.f32.mrf.mxu2 }
 0x1e8   : > { %1466 = vmatmul.msk.f32.gmra.mxu3 %vm528_vm0, %v807_v59 }
 0x1ef   : > { %v810_v60 = vpop.f32.mrf.mxu2 }
 0x1f0   : > { %1467 = vmatmul.msk.f32.gmra.mxu3 %vm528_vm0, %v810_v60  ;;  %v1030_v60 = vpop.permute.xlu1 %1029 }
 0x1f7   : > { %v813_v61 = vpop.f32.mrf.mxu2 }
 0x1f8   : > { %1468 = vmatmul.msk.f32.gmra.mxu3 %vm528_vm0, %v813_v61 }
 0x1ff   : > { %v816_v63 = vpop.f32.mrf.mxu2 }
 0x200   : > { %1469 = vmatmul.msk.f32.gmra.mxu3 %vm528_vm0, %v816_v63 }
 0x207   : > { %v819_v0 = vpop.f32.mrf.mxu2 }
 0x208   : > { %1470 = vmatmul.msk.f32.gmra.mxu3 %vm528_vm0, %v819_v0 }
 0x20f   : > { %v822_v1 = vpop.f32.mrf.mxu2 }
 0x210   : > { %1471 = vmatmul.msk.f32.gmra.mxu3 %vm528_vm0, %v822_v1  ;;  %v1025_v1 = vpop.permute.xlu2 %1024 }
 0x217   : > { %v825_v2 = vpop.f32.mrf.mxu2 }
 0x218   : > { %1472 = vmatmul.msk.f32.gmra.mxu3 %vm528_vm0, %v825_v2 }
 0x21f   : > { %v828_v4 = vpop.f32.mrf.mxu2 }
 0x220   : > { %1473 = vmatmul.msk.f32.gmra.mxu3 %vm528_vm0, %v828_v4 }
 0x227   : > { %v831_v5 = vpop.f32.mrf.mxu2 }
 0x228   : > { %1474 = vmatmul.msk.f32.gmra.mxu3 %vm528_vm0, %v831_v5 }
 0x22f   : > { %v834_v6 = vpop.f32.mrf.mxu2 }
 0x230   : > { %1475 = vmatmul.msk.f32.gmra.mxu3 %vm528_vm0, %v834_v6 }
 0x23b   : > { %v907_v9 = vpop.f32.mrf.mxu3 }
 0x23c   : > { %v1976_v10 = vadd.f32 %v907_v9, %v708_v8  ;;  %v1015_v9 = vpop.permute.xlu1 %1014 }
 0x243   : > { %v910_v13 = vpop.f32.mrf.mxu3 }
 0x244   : > { %v1980_v14 = vadd.f32 %v910_v13, %v711_v12 }
 0x24b   : > { %v913_v16 = vpop.f32.mrf.mxu3 }
 0x24c   : > { %v1984_v18 = vadd.f32 %v913_v16, %v714_v15 }
 0x253   : > { %v916_v20 = vpop.f32.mrf.mxu3 }
 0x254   : > { %v1988_v25 = vadd.f32 %v916_v20, %v717_v19 }
 0x25b   : > { %v919_v21 = vpop.f32.mrf.mxu3 }
 0x25c   : > { %v1992_v28 = vadd.f32 %v919_v21, %v720_v26 }
 0x263   : > { %v922_v22 = vpop.f32.mrf.mxu3 }
 0x264   : > { %v1996_v31 = vadd.f32 %v922_v22, %v723_v29 }
 0x266   : > { %v1072_v21 = vadd.f32 %v1015_v9, %v1996_v31 }
 0x26b   : > { %v925_v24 = vpop.f32.mrf.mxu3 }
 0x26c   : > { %v961_v34 = vadd.f32 %v925_v24, %v726_v32  ;;  %v1000_v32 = vpop.permute.xlu1 %999  ;;  %v1088_v24 = vmax.f32 %v1072_v21, 0.0 }
 0x273   : > { %v928_v27 = vpop.f32.mrf.mxu3 }
 0x274   : > { %v962_v30 = vadd.f32 %v928_v27, %v729_v35 }
 0x276   : > { %v1074_v16 = vadd.f32 %v1025_v1, %v962_v30  ;;  %v1069_v30 = vadd.f32 %v1000_v32, %v1984_v18  ;;  %v1101_v18 = vld [vmem:[#allocation4 + $0x10] sm:$0xff] }
 0x278   : > { %v1090_v26 = vmax.f32 %v1074_v16, 0.0 }
 0x27b   : > { %v931_v37 = vpop.f32.mrf.mxu3 }
 0x27c   : > { %v963_v38 = vadd.f32 %v931_v37, %v1882_v51 }
 0x27e   : > { %v1075_v13 = vadd.f32 %v1030_v60, %v963_v38 }
 0x283   : > { %v934_v33 = vpop.f32.mrf.mxu3 }
 0x284   : > { %v964_v5 = vadd.f32 %v934_v33, %v1887_v56  ;;  %v1091_v56 = vmax.f32 %v1075_v13, 0.0 }
 0x28b   : > { %v937_v39 = vpop.f32.mrf.mxu3 }
 0x28c   : > { %v965_v2 = vadd.f32 %v937_v39, %v1892_v62  ;;  %v1010_v62 = vpop.permute.xlu2 %1009  ;;  %v1085_v39 = vmax.f32 %v1069_v30, 0.0 }
 0x28d   : > { %v1071_v22 = vadd.f32 %v1010_v62, %v1992_v28 }
 0x28e   : > { %v1077_v7 = vadd.f32 %v1040_v52, %v965_v2 }
 0x28f   : > { %v1087_v37 = vmax.f32 %v1071_v22, 0.0 }
 0x290   : > { %v1093_v12 = vmax.f32 %v1077_v7, 0.0  ;;  %v1224_v7 = vld [vmem:[%s2054_s6] sm:$0xff] }
 0x293   : > { %v940_v42 = vpop.f32.mrf.mxu3 }
 0x294   : > { %v966_v61 = vadd.f32 %v940_v42, %v1897_v3  ;;  %v1076_v3 = vadd.f32 %v1035_v53, %v964_v5  ;;  %v995_v27 = vpop.permute.xlu2 %994 }
 0x296   : > { %v1078_v6 = vadd.f32 %v1045_v49, %v966_v61  ;;  %v1092_v15 = vmax.f32 %v1076_v3, 0.0  ;;  %v1106_v49 = vld [vmem:[#allocation4 + $0x38] sm:$0xff] }
 0x298   : > { %v1094_v8 = vmax.f32 %v1078_v6, 0.0 }
 0x29b   : > { %v943_v40 = vpop.f32.mrf.mxu3 }
 0x29c   : > { %v967_v57 = vadd.f32 %v943_v40, %v1911_v11  ;;  %v1099_v40 = vld [vmem:[#allocation4] sm:$0xff] }
 0x29e   : > { %v1079_v4 = vadd.f32 %v1050_v44, %v967_v57 }
 0x2a0   : > { %v1095_v11 = vmax.f32 %v1079_v4, 0.0 }
 0x2a3   : > { %v946_v48 = vpop.f32.mrf.mxu3 }
 0x2a4   : > { %v968_v51 = vadd.f32 %v946_v48, %v1919_v17  ;;  %v1105_v48 = vld [vmem:[#allocation4 + $0x30] sm:$0xff] }
 0x2a6   : > { %v1080_v0 = vadd.f32 %v1055_v45, %v968_v51  ;;  %v1104_v45 = vld [vmem:[#allocation4 + $0x28] sm:$0xff] }
 0x2a8   : > { %v1096_v17 = vmax.f32 %v1080_v0, 0.0  ;;  %v1256_v0 = vld [vmem:[%s2055_s7] sm:$0xff] }
 0x2ab   : > { %v949_v43 = vpop.f32.mrf.mxu3 }
 0x2ac   : > { %v969_v47 = vadd.f32 %v949_v43, %v1927_v23  ;;  %v1020_v23 = vpop.permute.xlu0 %1019 }
 0x2ad   : > { %v1073_v20 = vadd.f32 %v1020_v23, %v961_v34  ;;  %v1068_v34 = vadd.f32 %v995_v27, %v1980_v14  ;;  %v1149_v14 = vld [vmem:[%s2053_s5 + $0x8] sm:$0xff] }
 0x2ae   : > { %v1081_v59 = vadd.f32 %v1060_v50, %v969_v47  ;;  %1189 = vmatpush.msrb.mxu1 %v1149_v14  ;;  %v1148_v50 = vld [vmem:[%s2053_s5] sm:$0xff] }
 0x2af   : > { %v1089_v29 = vmax.f32 %v1073_v20, 0.0  ;;  %v1084_v28 = vmax.f32 %v1068_v34, 0.0 }
 0x2b0   : > { %v1097_v36 = vmax.f32 %v1081_v59, 0.0  ;;  %1190 = vmatpush.msrb.mxu1 %v1148_v50 }
 0x2b2   : > { %1279 = vmatpush.msra.mxu1 %v1256_v0 }
 0x2b3   : > { %v952_v54 = vpop.f32.mrf.mxu3 }
 0x2b4   : > { %v970_v55 = vadd.f32 %v952_v54, %v753_v46  ;;  %v1005_v19 = vpop.permute.xlu0 %1004 }
 0x2b5   : > { %v1070_v35 = vadd.f32 %v1005_v19, %v1988_v25  ;;  %v1100_v25 = vld [vmem:[#allocation4 + $0x8] sm:$0xff] }
 0x2b6   : > { %v1082_v58 = vadd.f32 %v1065_v41, %v970_v55  ;;  %v1102_v41 = vld [vmem:[#allocation4 + $0x18] sm:$0xff] }
 0x2b7   : > { %v1086_v33 = vmax.f32 %v1070_v35, 0.0 }
 0x2b8   : > { %v1098_v63 = vmax.f32 %v1082_v58, 0.0 }
 0x2ba   : > { %1107 = vmatpush.msrb.mxu0 %v1098_v63 }
 0x2bc   : > { %1108 = vmatpush.msrb.mxu0 %v1097_v36  ;;  %v990_v38 = vpop.permute.xlu0 %989 }
 0x2bd   : > { %v1067_v31 = vadd.f32 %v990_v38, %v1976_v10  ;;  %v1103_v10 = vld [vmem:[#allocation4 + $0x20] sm:$0xff] }
 0x2be   : > { %1109 = vmatpush.msrb.mxu0 %v1096_v17 }
 0x2bf   : > { %v1083_v42 = vmax.f32 %v1067_v31, 0.0 }
 0x2c0   : > { %1110 = vmatpush.msrb.mxu0 %v1095_v11 }
 0x2c2   : > { %1111 = vmatpush.msrb.mxu0 %v1094_v8  ;;  %v1225_v8 = vld [vmem:[%s2054_s6 + $0x8] sm:$0xff] }
 0x2c4   : > { %1112 = vmatpush.msrb.mxu0 %v1093_v12 }
 0x2c6   : > { %1113 = vmatpush.msrb.mxu0 %v1092_v15 }
 0x2c8   : > { %1114 = vmatpush.msrb.mxu0 %v1091_v56 }
 0x2ca   : > { %1115 = vmatpush.msrb.mxu0 %v1090_v26 }
 0x2cc   : > { %1116 = vmatpush.msrb.mxu0 %v1089_v29 }
 0x2ce   : > { %1117 = vmatpush.msrb.mxu0 %v1088_v24 }
 0x2d0   : > { %1118 = vmatpush.msrb.mxu0 %v1087_v37 }
 0x2d2   : > { %1119 = vmatpush.msrb.mxu0 %v1086_v33 }
 0x2d4   : > { %1120 = vmatpush.msrb.mxu0 %v1085_v39 }
 0x2d6   : > { %1121 = vmatpush.msrb.mxu0 %v1084_v28 }
 0x2d8   : > { %1122 = vmatpush.msrb.mxu0 %v1083_v42 }
 0x2d9   : > { %1123 = vmatmul.f32.vlgmr.msrb.gmra.mxu0 %v1099_v40 }
 0x2e1   : > { %1126 = vmatmul.f32.gmra.mxu0 %v1100_v25 }
 0x2e9   : > { %1129 = vmatmul.f32.gmra.mxu0 %v1101_v18 }
 0x2f1   : > { %1132 = vmatmul.f32.gmra.mxu0 %v1102_v41 }
 0x2f9   : > { %1135 = vmatmul.f32.gmra.mxu0 %v1103_v10 }
 0x301   : > { %1138 = vmatmul.f32.gmra.mxu0 %v1104_v45 }
 0x309   : > { %1141 = vmatmul.f32.gmra.mxu0 %v1105_v48 }
 0x311   : > { %1144 = vmatmul.f32.gmra.mxu0 %v1106_v49 }
 0x356   : > { %v1124_v43 = vpop.f32.mrf.mxu0 }
 0x357   : > { %1476 = vmatmul.msk.f32.vlgmr.msrb.gmra.mxu1 %vm1150_vm1, %v1124_v43 }
 0x35e   : > { %v1127_v44 = vpop.f32.mrf.mxu0 }
 0x35f   : > { %1477 = vmatmul.msk.f32.gmra.mxu1 %vm1150_vm1, %v1127_v44 }
 0x366   : > { %v1130_v52 = vpop.f32.mrf.mxu0 }
 0x367   : > { %1478 = vmatmul.msk.f32.gmra.mxu1 %vm1150_vm1, %v1130_v52 }
 0x36e   : > { %v1133_v53 = vpop.f32.mrf.mxu0 }
 0x36f   : > { %1479 = vmatmul.msk.f32.gmra.mxu1 %vm1150_vm1, %v1133_v53 }
 0x376   : > { %v1136_v46 = vpop.f32.mrf.mxu0 }
 0x377   : > { %1480 = vmatmul.msk.f32.gmra.mxu1 %vm1150_vm1, %v1136_v46 }
 0x37e   : > { %v1139_v47 = vpop.f32.mrf.mxu0 }
 0x37f   : > { %1481 = vmatmul.msk.f32.gmra.mxu1 %vm1150_vm1, %v1139_v47 }
 0x386   : > { %v1142_v54 = vpop.f32.mrf.mxu0 }
 0x387   : > { %1482 = vmatmul.msk.f32.gmra.mxu1 %vm1150_vm1, %v1142_v54 }
 0x38e   : > { %v1145_v51 = vpop.f32.mrf.mxu0 }
 0x38f   : > { %1483 = vmatmul.msk.f32.gmra.mxu1 %vm1150_vm1, %v1145_v51 }
 0x3d4   : > { %v1192_v55 = vpop.f32.mrf.mxu1 }
 0x3d5   : > { %v1216_v11 = vmax.f32 %v1192_v55, 0.0 }
 0x3dc   : > { %v1195_v57 = vpop.f32.mrf.mxu1 }
 0x3dd   : > { %v1217_v6 = vmax.f32 %v1195_v57, 0.0 }
 0x3e4   : > { %v1198_v58 = vpop.f32.mrf.mxu1 }
 0x3e5   : > { %v1218_v17 = vmax.f32 %v1198_v58, 0.0 }
 0x3ec   : > { %v1201_v59 = vpop.f32.mrf.mxu1 }
 0x3ed   : > { %v1219_v5 = vmax.f32 %v1201_v59, 0.0 }
 0x3f4   : > { %v1204_v60 = vpop.f32.mrf.mxu1 }
 0x3f5   : > { %v1220_v23 = vmax.f32 %v1204_v60, 0.0 }
 0x3fc   : > { %v1207_v61 = vpop.f32.mrf.mxu1 }
 0x3fd   : > { %v1221_v4 = vmax.f32 %v1207_v61, 0.0 }
 0x404   : > { %v1210_v63 = vpop.f32.mrf.mxu1 }
 0x405   : > { %v1222_v36 = vmax.f32 %v1210_v63, 0.0 }
 0x40c   : > { %v1213_v1 = vpop.f32.mrf.mxu1 }
 0x40d   : > { %v1223_v2 = vmax.f32 %v1213_v1, 0.0 }
 0x40f   : > { %1241 = vmatpush.msra.mxu0 %v1223_v2 }
 0x411   : > { %1242 = vmatpush.msra.mxu0 %v1222_v36 }
 0x413   : > { %1243 = vmatpush.msra.mxu0 %v1221_v4 }
 0x415   : > { %1244 = vmatpush.msra.mxu0 %v1220_v23 }
 0x417   : > { %1245 = vmatpush.msra.mxu0 %v1219_v5 }
 0x419   : > { %1246 = vmatpush.msra.mxu0 %v1218_v17 }
 0x41b   : > { %1247 = vmatpush.msra.mxu0 %v1217_v6 }
 0x41d   : > { %1248 = vmatpush.msra.mxu0 %v1216_v11 }
 0x41e   : > { %1484 = vmatmul.msk.f32.vlgmr.msra.gmra.mxu0 %vm1226_vm2, %v1224_v7 }
 0x426   : > { %1485 = vmatmul.msk.f32.gmra.mxu0 %vm1226_vm2, %v1225_v8 }
 0x49b   : > { %v1250_v3 = vpop.f32.mrf.mxu0 }
 0x49c   : > { %1486 = vmatmul.msk.f32.vlgmr.msra.gmra.mxu1 %vm1257_vm3, %v1250_v3 }
 0x4a3   : > { %v1253_v9 = vpop.f32.mrf.mxu0 }
 0x4a4   : > { %1487 = vmatmul.msk.f32.gmra.mxu1 %vm1257_vm3, %v1253_v9 }
 0x519   : > { %v1281_v12 = vpop.f32.mrf.mxu1 }
 0x51a   : > { %v1287_v13 = vmax.f32 %v1281_v12, 0.0 }
 0x51c   : > { %v1488_v62 = vmul.f32 -1.442695, %v1287_v13 }
 0x51e   : > { %1529 = vpow2.f32 %v1488_v62 }
 0x521   : > { %v1284_v15 = vpop.f32.mrf.mxu1 }
 0x522   : > { %v1288_v16 = vmax.f32 %v1284_v15, 0.0 }
 0x524   : > { %v1530_v19 = vpop.eup %1529  ;;  %v1489_v56 = vmul.f32 -1.442695, %v1288_v16 }
 0x525   : > { %v1295_v20 = vadd.f32 1.0, %v1530_v19 }
 0x526   : > { %1531 = vpow2.f32 %v1489_v56 }
 0x527   : > { %1533 = vrcp.f32 %v1295_v20  ;;  %v1308_v24 = vand.u32 2147483648, %v1295_v20  ;;  %v1306_v27 = vand.u32 2147483647, %v1295_v20  ;;  %vm1302_vm5 = vweird.f32 %v1295_v20 }
 0x529   : > { %v1309_v38 = vor.u32 1.1754944e-38, %v1308_v24  ;;  %vm1307_vm8 = vcmp.eq.f32.partialorder %v1306_v27, 8.507059e+37 }
 0x52c   : > { %v1532_v26 = vpop.eup %1531 }
 0x52d   : > { %v1534_v21 = vpop.eup %1533  ;;  %v1296_v29 = vadd.f32 1.0, %v1532_v26 }
 0x52e   : > { %v1298_v22 = vmul.f32 %v1534_v21, %v1295_v20  ;;  %vm1303_vm4 = vweird.f32 %v1534_v21 }
 0x52f   : > { %1535 = vrcp.f32 %v1296_v29  ;;  %vm1304_vm6 = vmor %vm1302_vm5, %vm1303_vm4  ;;  %v1323_v28 = vand.u32 2147483648, %v1296_v29  ;;  %v1321_v40 = vand.u32 2147483647, %v1296_v29  ;;  %vm1317_vm10 = vweird.f32 %v1296_v29 }
 0x530   : > { %v1299_v32 = vsub.f32 1.0, %v1298_v22 }
 0x531   : > { %v1324_v18 = vor.u32 1.1754944e-38, %v1323_v28  ;;  %vm1322_vm12 = vcmp.eq.f32.partialorder %v1321_v40, 8.507059e+37 }
 0x532   : > { %v1300_v35 = vmul.f32 %v1534_v21, %v1299_v32 }
 0x534   : > { %v1301_v30 = vadd.f32 %v1534_v21, %v1300_v35 }
 0x535   : > { %v1536_v37 = vpop.eup %1535 }
 0x536   : > { %v1305_v34 = vsel %vm1304_vm6, %v1534_v21, %v1301_v30  ;;  %v1313_v33 = vmul.f32 %v1536_v37, %v1296_v29  ;;  %vm1318_vm9 = vweird.f32 %v1536_v37 }
 0x537   : > { %v1310_v31 = vsel %vm1307_vm8, %v1309_v38, %v1305_v34  ;;  %vm1319_vm11 = vmor %vm1317_vm10, %vm1318_vm9 }
 0x538   : > { %1328 = vst.msk [vmem:[%s339_s13] sm:$0xff] %vm1327_vm7, %v1310_v31  ;;  %v1314_v39 = vsub.f32 1.0, %v1313_v33 }
 0x53a   : > { %v1315_v42 = vmul.f32 %v1536_v37, %v1314_v39 }
 0x53c   : > { %v1316_v25 = vadd.f32 %v1536_v37, %v1315_v42 }
 0x53e   : > { %v1320_v41 = vsel %vm1319_vm11, %v1536_v37, %v1316_v25 }
 0x53f   : > { %v1325_v14 = vsel %vm1322_vm12, %v1324_v18, %v1320_v41 }
 0x540   : > { %1329 = vst.msk [vmem:[%s339_s13 + $0x8] sm:$0xff] %vm1327_vm7, %v1325_v14 }
 0x541 PF: > { %s20_s27 = sadd.s32 1, %s1611_s27  }
 0x542   : > { %p17_p7 = scmp.ge.s32.totalorder %s20_s27, 4  }
 0x544   :  { %19 = sbr.rel (!%p17_p7) target bundleno = 2 (0x2), region = 95 }
 0x549   :  { %1351 = vsyncpa [#allocation3], 1 }
 0x54a   :  { %1353 = vsyncpa [#allocation3 + $0x1], 1 }
 0x54b   :  { %1354 = vsyncpa [#allocation5], 1 }

</bundles_post_ra>
